<compile_context>
chip_gen: v6e
topology: v6e:2x2x1
jax: 0.10.0
libtpu: 0.0.40
codegen_flags: <defaults>
</compile_context>

<pallas_src>
import jax
import jax.numpy as jnp
import numpy as np
from jax.experimental import pallas as pl
from jax.experimental.pallas import tpu as pltpu


def _round_up(x, m):
    return ((x + m - 1) // m) * m


def _mode_selection_kernel(agent_ref, lane_ref, nghl_ref, ngh_ref, label_ref,
                           w1a_ref, w1l_ref, w1nl_ref, w1n_ref, b1_ref,
                           w2_ref, b2_ref, out_ref):
    f32 = jnp.float32
    label = label_ref[...]                    # (TB, P)
    P = label.shape[1]
    lane = lane_ref[...]                      # (TB, P*L)
    nghl = nghl_ref[...]                      # (TB, P*L)
    ngh = ngh_ref[...]                        # (TB, P*T)
    agent = agent_ref[...]                    # (TB, T)
    L = lane.shape[1] // P
    T = ngh.shape[1] // P
    TB = lane.shape[0]

    # ---- embedder: relu(context @ W1 + b1), batch-major (TB, P*L) ----
    # agent contributes identically to every path (horizontally tiled weight);
    # the per-path segments use block-diagonal weights so their outputs land
    # directly in the (TB, P*L) layout the classifier consumes.
    emb = (jnp.dot(agent, w1a_ref[...], preferred_element_type=f32)
           + jnp.dot(lane, w1l_ref[...], preferred_element_type=f32)
           + jnp.dot(nghl, w1nl_ref[...], preferred_element_type=f32)
           + jnp.dot(ngh, w1n_ref[...], preferred_element_type=f32)
           + b1_ref[...])
    emb = jnp.maximum(emb, 0.0)

    # ---- classifier: (TB, P*L) @ (P*L, SEG); W2 zero-padded to SEG lanes ----
    logits = jnp.dot(emb, w2_ref[...], preferred_element_type=f32) + b2_ref[...]

    # ---- best-path one-hot: first index reaching the row max ----
    # Matches torch.argwhere(lane_label[b] == 1)[0][0] for clean one-hot
    # labels; for soft/tied labels this picks the argmax (lowest index).
    rowmax = jnp.max(label, axis=1, keepdims=True)
    iota_p = jax.lax.broadcasted_iota(jnp.int32, label.shape, 1)
    first_idx = jnp.min(jnp.where(label >= rowmax, iota_p, P),
                        axis=1, keepdims=True)            # (TB, 1)
    onehot = (iota_p == first_idx).astype(f32)            # (TB, P)

    # ---- selection: unrolled static-slice multiply-accumulate (pure VPU) ----
    best_lane = jnp.zeros((TB, L), f32)
    best_nghl = jnp.zeros((TB, L), f32)
    best_ngh = jnp.zeros((TB, T), f32)
    for p in range(P):                                    # P is small & static
        w = onehot[:, p:p + 1]
        best_lane = best_lane + w * lane[:, p * L:(p + 1) * L]
        best_nghl = best_nghl + w * nghl[:, p * L:(p + 1) * L]
        best_ngh = best_ngh + w * ngh[:, p * T:(p + 1) * T]

    # ---- single lane-dense store:
    #      [best_lane | best_ngh_lane | best_ngh | logits(padded)] ----
    out_ref[...] = jnp.concatenate([best_lane, best_nghl, best_ngh, logits],
                                   axis=1)


def mode_selection_forward(agent_context, lane_contexts, ngh_lane_context,
                           ngh_contexts, lane_label, params, block_b=1024):
    """Pallas implementation of ModeSelection.forward (isTrain=True path)."""
    B, P, L = lane_contexts.shape
    T = agent_context.shape[1]
    SELW = 2 * L + T                          # selected-feature width
    F_out = _round_up(SELW + P, 128)          # lane-dense output slab width
    SEG = F_out - SELW                        # zero-padded logits segment

    W1, b1, W2, b2 = params["W1"], params["b1"], params["W2"], params["b2"]

    # ---- weight prep (tiny; pure layout — would be cached in a real model) --
    # context_cat order in the PyTorch module: (agent, lane, ngh_lane, ngh)
    W1_a = W1[:T]                                     # (T, L)
    W1_l = W1[T:T + L]                                # (L, L)
    W1_nl = W1[T + L:T + 2 * L]                       # (L, L)
    W1_n = W1[T + 2 * L:]                             # (T, L)
    eye_p = jnp.eye(P, dtype=W1.dtype)
    w1a_t = jnp.tile(W1_a, (1, P))                                    # (T, P*L)
    w1l_bd = jnp.einsum("pq,dl->pdql", eye_p, W1_l).reshape(P * L, P * L)
    w1nl_bd = jnp.einsum("pq,dl->pdql", eye_p, W1_nl).reshape(P * L, P * L)
    w1n_bd = jnp.einsum("pq,dl->pdql", eye_p, W1_n).reshape(P * T, P * L)
    b1_t = jnp.tile(b1.reshape(1, L), (1, P))                          # (1, P*L)
    w2_pad = jnp.zeros((P * L, SEG), W2.dtype).at[:, :P].set(W2)
    b2_pad = jnp.zeros((1, SEG), b2.dtype).at[:, :P].set(b2.reshape(1, P))

    # ---- batch-dependent inputs: free row-major reshapes only (no concat) --
    agent = agent_context
    lane_flat = lane_contexts.reshape(B, P * L)
    nghl_flat = ngh_lane_context.reshape(B, P * L)
    ngh_flat = ngh_contexts.reshape(B, P * T)
    label_f = lane_label.astype(jnp.float32)

    # ---- batch tile: big tile to amortize per-step overhead, but keep >=2
    #      grid steps (v7x megacore) when the batch is large enough ----------
    if B <= 8:
        TB = B                                   # single block == full array
    else:
        Bp8 = _round_up(B, 8)
        TB = max(8, (min(block_b, Bp8) // 8) * 8)
        if TB >= Bp8 and Bp8 >= 16:
            TB = _round_up(pl.cdiv(Bp8, 2), 8)   # split across 2 TensorCores
    nb = pl.cdiv(B, TB)
    Bp = nb * TB
    if Bp > B:
        pad = Bp - B
        agent = jnp.pad(agent, ((0, pad), (0, 0)))
        lane_flat = jnp.pad(lane_flat, ((0, pad), (0, 0)))
        nghl_flat = jnp.pad(nghl_flat, ((0, pad), (0, 0)))
        ngh_flat = jnp.pad(ngh_flat, ((0, pad), (0, 0)))
        label_f = jnp.pad(label_f, ((0, pad), (0, 0)))

    out = pl.pallas_call(
        _mode_selection_kernel,
        out_shape=jax.ShapeDtypeStruct((Bp, F_out), jnp.float32),
        grid=(nb,),
        in_specs=[
            pl.BlockSpec((TB, T), lambda i: (i, 0)),         # agent
            pl.BlockSpec((TB, P * L), lambda i: (i, 0)),     # lane_contexts
            pl.BlockSpec((TB, P * L), lambda i: (i, 0)),     # ngh_lane_context
            pl.BlockSpec((TB, P * T), lambda i: (i, 0)),     # ngh_contexts
            pl.BlockSpec((TB, P), lambda i: (i, 0)),         # lane_label
            pl.BlockSpec((T, P * L), lambda i: (0, 0)),      # W1 agent (tiled)
            pl.BlockSpec((P * L, P * L), lambda i: (0, 0)),  # W1 lane (blkdiag)
            pl.BlockSpec((P * L, P * L), lambda i: (0, 0)),  # W1 ngh_lane
            pl.BlockSpec((P * T, P * L), lambda i: (0, 0)),  # W1 ngh
            pl.BlockSpec((1, P * L), lambda i: (0, 0)),      # b1 (tiled)
            pl.BlockSpec((P * L, SEG), lambda i: (0, 0)),    # W2 (zero-padded)
            pl.BlockSpec((1, SEG), lambda i: (0, 0)),        # b2 (zero-padded)
        ],
        out_specs=pl.BlockSpec((TB, F_out), lambda i: (i, 0)),
        compiler_params=pltpu.CompilerParams(
            dimension_semantics=("parallel",),               # shard over TCs
            vmem_limit_bytes=32 * 1024 * 1024),
    )(agent, lane_flat, nghl_flat, ngh_flat, label_f,
      w1a_t, w1l_bd, w1nl_bd, w1n_bd, b1_t, w2_pad, b2_pad)

    out = out[:B]
    logits = out[:, SELW:SELW + P]
    return (logits,
            out[:, :L],                  # best_lane_contexts
            out[:, L:2 * L],             # best_ngh_lane_contexts
            out[:, 2 * L:SELW])          # best_ngh_contexts


def reference_forward(agent_context, lane_contexts, ngh_lane_context,
                      ngh_contexts, lane_label, params):
    """Plain-JAX reference mirroring the PyTorch forward."""
    B, P, L = lane_contexts.shape
    T = agent_context.shape[1]
    agent_rep = jnp.broadcast_to(agent_context[:, None, :], (B, P, T))
    cat = jnp.concatenate(
        [agent_rep, lane_contexts, ngh_lane_context, ngh_contexts], axis=2)
    emb = jax.nn.relu(cat.reshape(B * P, -1) @ params["W1"] + params["b1"])
    logits = emb.reshape(B, P * L) @ params["W2"] + params["b2"]
    idx = jnp.argmax(lane_label == 1, axis=1)
    rows = jnp.arange(B)
    return (logits,
            lane_contexts[rows, idx],
            ngh_lane_context[rows, idx],
            ngh_contexts[rows, idx])


def _run_case(key, batch, num_max_paths, lane_feat_dim, traj_enc_h_dim,
              params, block_b):
    k = jax.random.split(key, 5)
    agent_context = jax.random.normal(k[0], (batch, traj_enc_h_dim), jnp.float32)
    lane_contexts = jax.random.normal(
        k[1], (batch, num_max_paths, lane_feat_dim), jnp.float32)
    ngh_lane_context = jax.random.normal(
        k[2], (batch, num_max_paths, lane_feat_dim), jnp.float32)
    ngh_contexts = jax.random.normal(
        k[3], (batch, num_max_paths, traj_enc_h_dim), jnp.float32)
    label_pos = jax.random.randint(k[4], (batch,), 0, num_max_paths)
    lane_label = jax.nn.one_hot(label_pos, num_max_paths, dtype=jnp.float32)

    outs = mode_selection_forward(agent_context, lane_contexts,
                                  ngh_lane_context, ngh_contexts, lane_label,
                                  params, block_b=block_b)
    outs = jax.block_until_ready(outs)
    refs = reference_forward(agent_context, lane_contexts, ngh_lane_context,
                             ngh_contexts, lane_label, params)
    for o, r in zip(outs, refs):
        np.testing.assert_allclose(np.asarray(o), np.asarray(r),
                                   rtol=1e-5, atol=1e-5)


if __name__ == "__main__":
    # Small shapes consistent with the module's forward signature.
    num_max_paths = 4
    lane_feat_dim = 32
    traj_enc_h_dim = 32
    Din = 2 * lane_feat_dim + 2 * traj_enc_h_dim       # embedder input dim

    key = jax.random.PRNGKey(0)
    kp, k_a, k_b, k_c = jax.random.split(key, 4)
    kw = jax.random.split(kp, 4)

    # Deterministic synthetic parameters (Linear weights stored as (in, out)).
    params = {
        "W1": 0.1 * jax.random.normal(kw[0], (Din, lane_feat_dim), jnp.float32),
        "b1": 0.1 * jax.random.normal(kw[1], (lane_feat_dim,), jnp.float32),
        "W2": 0.1 * jax.random.normal(
            kw[2], (lane_feat_dim * num_max_paths, num_max_paths), jnp.float32),
        "b2": 0.1 * jax.random.normal(kw[3], (num_max_paths,), jnp.float32),
    }

    # Toy batch (single grid step, blocks == full arrays).
    _run_case(k_a, 2, num_max_paths, lane_feat_dim, traj_enc_h_dim,
              params, block_b=1024)
    # Batch exercising the grid axis + padding path with a small tile.
    _run_case(k_b, 20, num_max_paths, lane_feat_dim, traj_enc_h_dim,
              params, block_b=8)
    # Larger batch exercising the ">=2 grid steps" megacore split with the
    # default (large) tile.
    _run_case(k_c, 200, num_max_paths, lane_feat_dim, traj_enc_h_dim,
              params, block_b=1024)

    print("KERNEL_OK")
</pallas_src>

<mosaic_0001>
module attributes {stable_mosaic.version = 11 : i64} {
  func.func @_mode_selection_kernel(%arg0: i32, %arg1: memref<2x32xf32, #tpu.memory_space<vmem>>, %arg2: memref<2x128xf32, #tpu.memory_space<vmem>>, %arg3: memref<2x128xf32, #tpu.memory_space<vmem>>, %arg4: memref<2x128xf32, #tpu.memory_space<vmem>>, %arg5: memref<2x4xf32, #tpu.memory_space<vmem>>, %arg6: memref<32x128xf32, #tpu.memory_space<vmem>>, %arg7: memref<128x128xf32, #tpu.memory_space<vmem>>, %arg8: memref<128x128xf32, #tpu.memory_space<vmem>>, %arg9: memref<128x128xf32, #tpu.memory_space<vmem>>, %arg10: memref<1x128xf32, #tpu.memory_space<vmem>>, %arg11: memref<128x32xf32, #tpu.memory_space<vmem>>, %arg12: memref<1x32xf32, #tpu.memory_space<vmem>>, %arg13: memref<2x128xf32, #tpu.memory_space<vmem>>) attributes {dimension_semantics = [#tpu.dimension_semantics<parallel>], iteration_bounds = array<i64: 1>, scalar_prefetch = 0 : i64, scratch_operands = 0 : i64, tpu.core_type = #tpu.core_type<tc>, window_params = [{transform_indices = @transform_0, window_bounds = array<i64: 2, 32>}, {transform_indices = @transform_1, window_bounds = array<i64: 2, 128>}, {transform_indices = @transform_2, window_bounds = array<i64: 2, 128>}, {transform_indices = @transform_3, window_bounds = array<i64: 2, 128>}, {transform_indices = @transform_4, window_bounds = array<i64: 2, 4>}, {pipeline_mode = #tpu.pipeline_mode<synchronous>, transform_indices = @transform_5, window_bounds = array<i64: 32, 128>}, {pipeline_mode = #tpu.pipeline_mode<synchronous>, transform_indices = @transform_6, window_bounds = array<i64: 128, 128>}, {pipeline_mode = #tpu.pipeline_mode<synchronous>, transform_indices = @transform_7, window_bounds = array<i64: 128, 128>}, {pipeline_mode = #tpu.pipeline_mode<synchronous>, transform_indices = @transform_8, window_bounds = array<i64: 128, 128>}, {pipeline_mode = #tpu.pipeline_mode<synchronous>, transform_indices = @transform_9, window_bounds = array<i64: 1, 128>}, {pipeline_mode = #tpu.pipeline_mode<synchronous>, transform_indices = @transform_10, window_bounds = array<i64: 128, 32>}, {pipeline_mode = #tpu.pipeline_mode<synchronous>, transform_indices = @transform_11, window_bounds = array<i64: 1, 32>}, {transform_indices = @transform_12, window_bounds = array<i64: 2, 128>}]} {
    %c0 = arith.constant 0 : index
    %c0_0 = arith.constant 0 : index
    %0 = vector.load %arg5[%c0, %c0_0] : memref<2x4xf32, #tpu.memory_space<vmem>>, vector<2x4xf32>
    %c0_1 = arith.constant 0 : index
    %c0_2 = arith.constant 0 : index
    %1 = vector.load %arg2[%c0_1, %c0_2] : memref<2x128xf32, #tpu.memory_space<vmem>>, vector<2x128xf32>
    %c0_3 = arith.constant 0 : index
    %c0_4 = arith.constant 0 : index
    %2 = vector.load %arg3[%c0_3, %c0_4] : memref<2x128xf32, #tpu.memory_space<vmem>>, vector<2x128xf32>
    %c0_5 = arith.constant 0 : index
    %c0_6 = arith.constant 0 : index
    %3 = vector.load %arg4[%c0_5, %c0_6] : memref<2x128xf32, #tpu.memory_space<vmem>>, vector<2x128xf32>
    %c0_7 = arith.constant 0 : index
    %c0_8 = arith.constant 0 : index
    %4 = vector.load %arg1[%c0_7, %c0_8] : memref<2x32xf32, #tpu.memory_space<vmem>>, vector<2x32xf32>
    %c0_9 = arith.constant 0 : index
    %c0_10 = arith.constant 0 : index
    %5 = vector.load %arg6[%c0_9, %c0_10] : memref<32x128xf32, #tpu.memory_space<vmem>>, vector<32x128xf32>
    %cst = arith.constant dense<0.000000e+00> : vector<2x128xf32>
    %6 = tpu.matmul %4, %5, %cst {dimension_numbers = #tpu.dot_dimension_numbers<[1], [0], [0], [1], [0, 0, 1, 1], [], []>} : vector<2x32xf32>, vector<32x128xf32>, vector<2x128xf32> -> vector<2x128xf32>
    %c0_11 = arith.constant 0 : index
    %c0_12 = arith.constant 0 : index
    %7 = vector.load %arg7[%c0_11, %c0_12] : memref<128x128xf32, #tpu.memory_space<vmem>>, vector<128x128xf32>
    %cst_13 = arith.constant dense<0.000000e+00> : vector<2x128xf32>
    %8 = tpu.matmul %1, %7, %cst_13 {dimension_numbers = #tpu.dot_dimension_numbers<[1], [0], [0], [1], [0, 0, 1, 1], [], []>} : vector<2x128xf32>, vector<128x128xf32>, vector<2x128xf32> -> vector<2x128xf32>
    %9 = arith.addf %6, %8 : vector<2x128xf32>
    %c0_14 = arith.constant 0 : index
    %c0_15 = arith.constant 0 : index
    %10 = vector.load %arg8[%c0_14, %c0_15] : memref<128x128xf32, #tpu.memory_space<vmem>>, vector<128x128xf32>
    %cst_16 = arith.constant dense<0.000000e+00> : vector<2x128xf32>
    %11 = tpu.matmul %2, %10, %cst_16 {dimension_numbers = #tpu.dot_dimension_numbers<[1], [0], [0], [1], [0, 0, 1, 1], [], []>} : vector<2x128xf32>, vector<128x128xf32>, vector<2x128xf32> -> vector<2x128xf32>
    %12 = arith.addf %9, %11 : vector<2x128xf32>
    %c0_17 = arith.constant 0 : index
    %c0_18 = arith.constant 0 : index
    %13 = vector.load %arg9[%c0_17, %c0_18] : memref<128x128xf32, #tpu.memory_space<vmem>>, vector<128x128xf32>
    %cst_19 = arith.constant dense<0.000000e+00> : vector<2x128xf32>
    %14 = tpu.matmul %3, %13, %cst_19 {dimension_numbers = #tpu.dot_dimension_numbers<[1], [0], [0], [1], [0, 0, 1, 1], [], []>} : vector<2x128xf32>, vector<128x128xf32>, vector<2x128xf32> -> vector<2x128xf32>
    %15 = arith.addf %12, %14 : vector<2x128xf32>
    %c0_20 = arith.constant 0 : index
    %c0_21 = arith.constant 0 : index
    %16 = vector.load %arg10[%c0_20, %c0_21] : memref<1x128xf32, #tpu.memory_space<vmem>>, vector<1x128xf32>
    %17 = vector.broadcast %16 : vector<1x128xf32> to vector<2x128xf32>
    %18 = arith.addf %15, %17 : vector<2x128xf32>
    %cst_22 = arith.constant 0.000000e+00 : f32
    %19 = vector.broadcast %cst_22 : f32 to vector<2x128xf32>
    %20 = arith.maximumf %18, %19 : vector<2x128xf32>
    %c0_23 = arith.constant 0 : index
    %c0_24 = arith.constant 0 : index
    %21 = vector.load %arg11[%c0_23, %c0_24] : memref<128x32xf32, #tpu.memory_space<vmem>>, vector<128x32xf32>
    %cst_25 = arith.constant dense<0.000000e+00> : vector<2x32xf32>
    %22 = tpu.matmul %20, %21, %cst_25 {dimension_numbers = #tpu.dot_dimension_numbers<[1], [0], [0], [1], [0, 0, 1, 1], [], []>} : vector<2x128xf32>, vector<128x32xf32>, vector<2x32xf32> -> vector<2x32xf32>
    %c0_26 = arith.constant 0 : index
    %c0_27 = arith.constant 0 : index
    %23 = vector.load %arg12[%c0_26, %c0_27] : memref<1x32xf32, #tpu.memory_space<vmem>>, vector<1x32xf32>
    %24 = vector.broadcast %23 : vector<1x32xf32> to vector<2x32xf32>
    %25 = arith.addf %22, %24 : vector<2x32xf32>
    %cst_28 = arith.constant dense<0xFF800000> : vector<2xf32>
    %26 = vector.multi_reduction <maximumf>, %0, %cst_28 [1] : vector<2x4xf32> to vector<2xf32>
    %27 = vector.shape_cast %26 : vector<2xf32> to vector<2x1xf32>
    %28 = tpu.iota {dimensions = array<i32: 1>} : vector<2x4xi32>
    %29 = vector.broadcast %27 : vector<2x1xf32> to vector<2x4xf32>
    %30 = arith.cmpf oge, %0, %29 : vector<2x4xf32>
    %c4_i32 = arith.constant 4 : i32
    %31 = vector.broadcast %c4_i32 : i32 to vector<2x4xi32>
    %32 = arith.select %30, %28, %31 : vector<2x4xi1>, vector<2x4xi32>
    %cst_29 = arith.constant dense<2147483647> : vector<2xi32>
    %33 = vector.multi_reduction <minsi>, %32, %cst_29 [1] : vector<2x4xi32> to vector<2xi32>
    %34 = vector.shape_cast %33 : vector<2xi32> to vector<2x1xi32>
    %35 = vector.broadcast %34 : vector<2x1xi32> to vector<2x4xi32>
    %36 = arith.cmpi eq, %28, %35 : vector<2x4xi32>
    %37 = arith.extui %36 : vector<2x4xi1> to vector<2x4xi32>
    %38 = arith.sitofp %37 : vector<2x4xi32> to vector<2x4xf32>
    %cst_30 = arith.constant 0.000000e+00 : f32
    %39 = vector.broadcast %cst_30 : f32 to vector<2x32xf32>
    %cst_31 = arith.constant 0.000000e+00 : f32
    %40 = vector.broadcast %cst_31 : f32 to vector<2x32xf32>
    %cst_32 = arith.constant 0.000000e+00 : f32
    %41 = vector.broadcast %cst_32 : f32 to vector<2x32xf32>
    %42 = vector.extract_strided_slice %38 {offsets = [0, 0], sizes = [2, 1], strides = [1, 1]} : vector<2x4xf32> to vector<2x1xf32>
    %43 = vector.extract_strided_slice %1 {offsets = [0, 0], sizes = [2, 32], strides = [1, 1]} : vector<2x128xf32> to vector<2x32xf32>
    %44 = vector.broadcast %42 : vector<2x1xf32> to vector<2x32xf32>
    %45 = arith.mulf %44, %43 : vector<2x32xf32>
    %46 = arith.addf %39, %45 : vector<2x32xf32>
    %47 = vector.extract_strided_slice %2 {offsets = [0, 0], sizes = [2, 32], strides = [1, 1]} : vector<2x128xf32> to vector<2x32xf32>
    %48 = vector.broadcast %42 : vector<2x1xf32> to vector<2x32xf32>
    %49 = arith.mulf %48, %47 : vector<2x32xf32>
    %50 = arith.addf %40, %49 : vector<2x32xf32>
    %51 = vector.extract_strided_slice %3 {offsets = [0, 0], sizes = [2, 32], strides = [1, 1]} : vector<2x128xf32> to vector<2x32xf32>
    %52 = vector.broadcast %42 : vector<2x1xf32> to vector<2x32xf32>
    %53 = arith.mulf %52, %51 : vector<2x32xf32>
    %54 = arith.addf %41, %53 : vector<2x32xf32>
    %55 = vector.extract_strided_slice %38 {offsets = [0, 1], sizes = [2, 1], strides = [1, 1]} : vector<2x4xf32> to vector<2x1xf32>
    %56 = vector.extract_strided_slice %1 {offsets = [0, 32], sizes = [2, 32], strides = [1, 1]} : vector<2x128xf32> to vector<2x32xf32>
    %57 = vector.broadcast %55 : vector<2x1xf32> to vector<2x32xf32>
    %58 = arith.mulf %57, %56 : vector<2x32xf32>
    %59 = arith.addf %46, %58 : vector<2x32xf32>
    %60 = vector.extract_strided_slice %2 {offsets = [0, 32], sizes = [2, 32], strides = [1, 1]} : vector<2x128xf32> to vector<2x32xf32>
    %61 = vector.broadcast %55 : vector<2x1xf32> to vector<2x32xf32>
    %62 = arith.mulf %61, %60 : vector<2x32xf32>
    %63 = arith.addf %50, %62 : vector<2x32xf32>
    %64 = vector.extract_strided_slice %3 {offsets = [0, 32], sizes = [2, 32], strides = [1, 1]} : vector<2x128xf32> to vector<2x32xf32>
    %65 = vector.broadcast %55 : vector<2x1xf32> to vector<2x32xf32>
    %66 = arith.mulf %65, %64 : vector<2x32xf32>
    %67 = arith.addf %54, %66 : vector<2x32xf32>
    %68 = vector.extract_strided_slice %38 {offsets = [0, 2], sizes = [2, 1], strides = [1, 1]} : vector<2x4xf32> to vector<2x1xf32>
    %69 = vector.extract_strided_slice %1 {offsets = [0, 64], sizes = [2, 32], strides = [1, 1]} : vector<2x128xf32> to vector<2x32xf32>
    %70 = vector.broadcast %68 : vector<2x1xf32> to vector<2x32xf32>
    %71 = arith.mulf %70, %69 : vector<2x32xf32>
    %72 = arith.addf %59, %71 : vector<2x32xf32>
    %73 = vector.extract_strided_slice %2 {offsets = [0, 64], sizes = [2, 32], strides = [1, 1]} : vector<2x128xf32> to vector<2x32xf32>
    %74 = vector.broadcast %68 : vector<2x1xf32> to vector<2x32xf32>
    %75 = arith.mulf %74, %73 : vector<2x32xf32>
    %76 = arith.addf %63, %75 : vector<2x32xf32>
    %77 = vector.extract_strided_slice %3 {offsets = [0, 64], sizes = [2, 32], strides = [1, 1]} : vector<2x128xf32> to vector<2x32xf32>
    %78 = vector.broadcast %68 : vector<2x1xf32> to vector<2x32xf32>
    %79 = arith.mulf %78, %77 : vector<2x32xf32>
    %80 = arith.addf %67, %79 : vector<2x32xf32>
    %81 = vector.extract_strided_slice %38 {offsets = [0, 3], sizes = [2, 1], strides = [1, 1]} : vector<2x4xf32> to vector<2x1xf32>
    %82 = vector.extract_strided_slice %1 {offsets = [0, 96], sizes = [2, 32], strides = [1, 1]} : vector<2x128xf32> to vector<2x32xf32>
    %83 = vector.broadcast %81 : vector<2x1xf32> to vector<2x32xf32>
    %84 = arith.mulf %83, %82 : vector<2x32xf32>
    %85 = arith.addf %72, %84 : vector<2x32xf32>
    %86 = vector.extract_strided_slice %2 {offsets = [0, 96], sizes = [2, 32], strides = [1, 1]} : vector<2x128xf32> to vector<2x32xf32>
    %87 = vector.broadcast %81 : vector<2x1xf32> to vector<2x32xf32>
    %88 = arith.mulf %87, %86 : vector<2x32xf32>
    %89 = arith.addf %76, %88 : vector<2x32xf32>
    %90 = vector.extract_strided_slice %3 {offsets = [0, 96], sizes = [2, 32], strides = [1, 1]} : vector<2x128xf32> to vector<2x32xf32>
    %91 = vector.broadcast %81 : vector<2x1xf32> to vector<2x32xf32>
    %92 = arith.mulf %91, %90 : vector<2x32xf32>
    %93 = arith.addf %80, %92 : vector<2x32xf32>
    %94 = tpu.concatenate %85, %89, %93, %25 in 1 : vector<2x32xf32>, vector<2x32xf32>, vector<2x32xf32>, vector<2x32xf32> -> vector<2x128xf32>
    %c0_33 = arith.constant 0 : index
    %c0_34 = arith.constant 0 : index
    %95 = vector.load %arg13[%c0_33, %c0_34] : memref<2x128xf32, #tpu.memory_space<vmem>>, vector<2x128xf32>
    tpu.vector_store %arg13[%c0_33, %c0_34], %94 {strides = array<i32>} : memref<2x128xf32, #tpu.memory_space<vmem>>, vector<2x128xf32>,
    return
  }
  func.func @transform_0(%arg0: i32) -> (i32, i32) {
    %c0_i32 = arith.constant 0 : i32
    %c0_i32_0 = arith.constant 0 : i32
    return %arg0, %c0_i32 : i32, i32
  }
  func.func @transform_1(%arg0: i32) -> (i32, i32) {
    %c0_i32 = arith.constant 0 : i32
    %c0_i32_0 = arith.constant 0 : i32
    return %arg0, %c0_i32 : i32, i32
  }
  func.func @transform_2(%arg0: i32) -> (i32, i32) {
    %c0_i32 = arith.constant 0 : i32
    %c0_i32_0 = arith.constant 0 : i32
    return %arg0, %c0_i32 : i32, i32
  }
  func.func @transform_3(%arg0: i32) -> (i32, i32) {
    %c0_i32 = arith.constant 0 : i32
    %c0_i32_0 = arith.constant 0 : i32
    return %arg0, %c0_i32 : i32, i32
  }
  func.func @transform_4(%arg0: i32) -> (i32, i32) {
    %c0_i32 = arith.constant 0 : i32
    %c0_i32_0 = arith.constant 0 : i32
    return %arg0, %c0_i32 : i32, i32
  }
  func.func @transform_5(%arg0: i32) -> (i32, i32) {
    %c0_i32 = arith.constant 0 : i32
    %c0_i32_0 = arith.constant 0 : i32
    %c0_i32_1 = arith.constant 0 : i32
    return %c0_i32, %c0_i32_0 : i32, i32
  }
  func.func @transform_6(%arg0: i32) -> (i32, i32) {
    %c0_i32 = arith.constant 0 : i32
    %c0_i32_0 = arith.constant 0 : i32
    %c0_i32_1 = arith.constant 0 : i32
    return %c0_i32, %c0_i32_0 : i32, i32
  }
  func.func @transform_7(%arg0: i32) -> (i32, i32) {
    %c0_i32 = arith.constant 0 : i32
    %c0_i32_0 = arith.constant 0 : i32
    %c0_i32_1 = arith.constant 0 : i32
    return %c0_i32, %c0_i32_0 : i32, i32
  }
  func.func @transform_8(%arg0: i32) -> (i32, i32) {
    %c0_i32 = arith.constant 0 : i32
    %c0_i32_0 = arith.constant 0 : i32
    %c0_i32_1 = arith.constant 0 : i32
    return %c0_i32, %c0_i32_0 : i32, i32
  }
  func.func @transform_9(%arg0: i32) -> (i32, i32) {
    %c0_i32 = arith.constant 0 : i32
    %c0_i32_0 = arith.constant 0 : i32
    %c0_i32_1 = arith.constant 0 : i32
    return %c0_i32, %c0_i32_0 : i32, i32
  }
  func.func @transform_10(%arg0: i32) -> (i32, i32) {
    %c0_i32 = arith.constant 0 : i32
    %c0_i32_0 = arith.constant 0 : i32
    %c0_i32_1 = arith.constant 0 : i32
    return %c0_i32, %c0_i32_0 : i32, i32
  }
  func.func @transform_11(%arg0: i32) -> (i32, i32) {
    %c0_i32 = arith.constant 0 : i32
    %c0_i32_0 = arith.constant 0 : i32
    %c0_i32_1 = arith.constant 0 : i32
    return %c0_i32, %c0_i32_0 : i32, i32
  }
  func.func @transform_12(%arg0: i32) -> (i32, i32) {
    %c0_i32 = arith.constant 0 : i32
    %c0_i32_0 = arith.constant 0 : i32
    return %arg0, %c0_i32 : i32, i32
  }
}

</mosaic_0001>

<bundles_post_ra>
// kernel: tpu_custom_call.1
= control target key start
LH: loop header
LB: loop body
LE: loop exit
PB: predicated region body
PF: predicated region fallthrough
CT: control target
= control target key end

     0   :  { %17 = vsyncpa [#allocation3], 0  ;;  %s1302_s0 = inlined_call_operand.vmem [shape: f32[2,32], index: 0, kind: input, shape index: {}]   ;;  %s1303_s1 = inlined_call_operand.vmem [shape: f32[2,128], index: 1, kind: input, shape index: {}]   ;;  %s1304_s2 = inlined_call_operand.vmem [shape: f32[2,128], index: 2, kind: input, shape index: {}]   ;;  %s1305_s3 = inlined_call_operand.vmem [shape: f32[2,128], index: 3, kind: input, shape index: {}]   ;;  %s1306_s4 = inlined_call_operand.vmem [shape: f32[2,4], index: 4, kind: input, shape index: {}]   ;;  %s1307_s5 = inlined_call_operand.vmem [shape: f32[32,128], index: 5, kind: input, shape index: {}]   ;;  %s1308_s6 = inlined_call_operand.vmem [shape: f32[128,128], index: 6, kind: input, shape index: {}]   ;;  %s1309_s7 = inlined_call_operand.hbm [shape: f32[128,128], index: 7, kind: input, shape index: {}]   ;;  %s1310_s8 = inlined_call_operand.hbm [shape: f32[128,128], index: 8, kind: input, shape index: {}]   ;;  %s1311_s9 = inlined_call_operand.vmem [shape: f32[1,128], index: 9, kind: input, shape index: {}]   ;;  %s1312_s10 = inlined_call_operand.vmem [shape: f32[128,32], index: 10, kind: input, shape index: {}]   ;;  %s1313_s11 = inlined_call_operand.vmem [shape: f32[1,32], index: 11, kind: input, shape index: {}]   ;;  %s1314_s12 = inlined_call_operand.hbm [shape: f32[2,128], index: 12, kind: output, shape index: {}]  }
   0x1   :  { %18 = vsyncpa [#allocation6], 0 }
   0x2   :  { %19 = vsyncpa [#allocation4], 0  ;;  %s965_s21 = smov [#allocation2]  }
   0x3   :  { %s39_s22 = sshll.u32 %s965_s21, 4  ;;  %s40_s22 = int_to_ptr.vmem [resolvable:$true] %s39_s22 }
   0x4   :  { %s907_s23 = scalar_lea.vmem %s40_s22, 2048  ;;  %p912_p1 = scmp.lt.s32.totalorder %s40_s22, %s40_s22 }
   0x5   :  { %p908_p0 = scmp.ne.s32.totalorder %s40_s22, %s907_s23  ;;  %p913_p2 = scmp.lt.s32.totalorder %s907_s23, %s907_s23 }
   0x7   :  { %p914_p3 = por %p913_p2, %p912_p1 }
   0x9   :  { %p915_p4 = pnand %p914_p3, %p908_p0 }
   0xb   :  { %918 = shalt.err (!%p915_p4)
}
   0xc   :  { %s966_s24 = smov 128   ;;  %s967_s25 = smov 8  }
   0xd   :  { %45 = dma.hbm_to_vmem [thread:$0]  %s1309_s7, 2048, %s40_s22, [#allocation3], %s966_s24, %s966_s24, %s967_s25  }
   0xe   :  { %s968_s28 = smov [#allocation5]  }
   0xf   :  { %s51_s29 = sshll.u32 %s968_s28, 4  ;;  %s52_s29 = int_to_ptr.vmem [resolvable:$true] %s51_s29 }
  0x10   :  { %s927_s30 = scalar_lea.vmem %s52_s29, 2048  ;;  %p932_p6 = scmp.lt.s32.totalorder %s52_s29, %s52_s29 }
  0x11   :  { %p928_p5 = scmp.ne.s32.totalorder %s52_s29, %s927_s30  ;;  %p933_p7 = scmp.lt.s32.totalorder %s927_s30, %s927_s30 }
  0x13   :  { %p934_p8 = por %p933_p7, %p932_p6 }
  0x15   :  { %p935_p9 = pnand %p934_p8, %p928_p5 }
  0x17   :  { %938 = shalt.err (!%p935_p9)
}
  0x18   :  { %57 = dma.hbm_to_vmem [thread:$0]  %s1310_s8, 2048, %s52_s29, [#allocation6], %s966_s24, %s966_s24, %s967_s25  }
  0x19   :  { %959 = dma.done.wait [#allocation3], 2048  }
  0x1a   :  { %960 = vsyncadd [#allocation3], 4294965248 }
  0x1b   :  { %961 = dma.done.wait [#allocation6], 2048  }
  0x1c   :  { %962 = vsyncadd [#allocation6], 4294965248  ;;  %vm515_vm0 = vcmask 25600   ;;  %v1053_v0 = vld [vmem:[%s1306_s4] sm:$0x3]  ;;  %v94_v2 = vld [vmem:[%s1308_s6 + $0x78] sm:$0xff]  ;;  %v519_v59 = vlaneseq }
  0x1d   :  { %v516_v1 = vsel %vm515_vm0, %v1053_v0, -inf  ;;  %v969_v3 = vmov 0.0   ;;  %v93_v4 = vld [vmem:[%s1308_s6 + $0x70] sm:$0xff]  ;;  %vm970_vm1 = vmmov 0   ;;  %v92_v5 = vld [vmem:[%s1308_s6 + $0x68] sm:$0xff]  ;;  %v78_v6 = vld [vmem:[%s1307_s5 + $0x18] sm:$0xff] }
  0x1e   :  { %517 = vmax.xlane.f32.xlu0 %v516_v1  ;;  %729 = vmatprep.subr.mxu0 %v969_v3  ;;  %v77_v7 = vld [vmem:[%s1307_s5 + $0x10] sm:$0xff]  ;;  %v91_v8 = vld [vmem:[%s1308_s6 + $0x60] sm:$0xff]  ;;  %v76_v9 = vld [vmem:[%s1307_s5 + $0x8] sm:$0xff]  ;;  %vm165_vm2 = vcmask 261120   ;;  %v1202_v60 = vand.u32 127, %v519_v59  ;;  %s976_s4 = smov 32  }
  0x1f   :  { %764 = vmatprep.subr.mxu1 %v969_v3  ;;  %730 = vmatpush3.msra.mxu0 %v94_v2  ;;  %v90_v10 = vld [vmem:[%s1308_s6 + $0x58] sm:$0xff]  ;;  %v75_v11 = vld [vmem:[%s1307_s5] sm:$0xff]  ;;  %v89_v12 = vld [vmem:[%s1308_s6 + $0x50] sm:$0xff]  ;;  %s977_s19 = smov 64   ;;  %vm631_vm6 = vcmask 523264   ;;  %s978_s22 = smov [#allocation7]  }
  0x20   :  { %772 = vmatprep.mubr.msk.f32.mxu1 %vm970_vm1, %v969_v3  ;;  %731 = vmatprep.subr.mxu0 %v969_v3  ;;  %v74_v13 = vld [vmem:[%s1302_s0] sm:$0x3]  ;;  %v88_v14 = vld [vmem:[%s1308_s6 + $0x48] sm:$0xff]  ;;  %v254_v15 = vld [vmem:[#allocation2 + $0x78] sm:$0xff]  ;;  %vm633_vm7 = vcmask 785408  }
  0x21   :  { %761 = vmatprep.mubr.msk.f32.mxu0 %vm970_vm1, %v969_v3  ;;  %732 = vmatpush3.msra.mxu0 %v93_v4  ;;  %v87_v16 = vld [vmem:[%s1308_s6 + $0x40] sm:$0xff]  ;;  %v253_v17 = vld [vmem:[#allocation2 + $0x70] sm:$0xff]  ;;  %v86_v18 = vld [vmem:[%s1308_s6 + $0x38] sm:$0xff] }
  0x22   :  { %733 = vmatprep.subr.mxu0 %v969_v3  ;;  %765 = vmatpush3.msra.mxu1 %v78_v6  ;;  %v252_v19 = vld [vmem:[#allocation2 + $0x68] sm:$0xff]  ;;  %v85_v20 = vld [vmem:[%s1308_s6 + $0x30] sm:$0xff]  ;;  %v251_v21 = vld [vmem:[#allocation2 + $0x60] sm:$0xff] }
  0x23   :  { %734 = vmatpush3.msra.mxu0 %v92_v5  ;;  %766 = vmatprep.subr.mxu1 %v969_v3  ;;  %v84_v22 = vld [vmem:[%s1308_s6 + $0x28] sm:$0xff]  ;;  %v250_v23 = vld [vmem:[#allocation2 + $0x58] sm:$0xff]  ;;  %v83_v24 = vld [vmem:[%s1308_s6 + $0x20] sm:$0xff] }
  0x24   :  { %735 = vmatprep.subr.mxu0 %v969_v3  ;;  %767 = vmatpush3.msra.mxu1 %v77_v7  ;;  %v249_v25 = vld [vmem:[#allocation2 + $0x50] sm:$0xff]  ;;  %v82_v26 = vld [vmem:[%s1308_s6 + $0x18] sm:$0xff]  ;;  %v248_v27 = vld [vmem:[#allocation2 + $0x48] sm:$0xff] }
  0x25   :  { %736 = vmatpush3.msra.mxu0 %v91_v8  ;;  %768 = vmatprep.subr.mxu1 %v969_v3  ;;  %v81_v28 = vld [vmem:[%s1308_s6 + $0x10] sm:$0xff]  ;;  %v247_v29 = vld [vmem:[#allocation2 + $0x40] sm:$0xff]  ;;  %v80_v30 = vld [vmem:[%s1308_s6 + $0x8] sm:$0xff]  ;;  %v971_v8 = vmov 2  }
  0x26   :  { %737 = vmatprep.subr.mxu0 %v969_v3  ;;  %769 = vmatpush3.msra.mxu1 %v76_v9  ;;  %v246_v31 = vld [vmem:[#allocation2 + $0x38] sm:$0xff]  ;;  %v79_v32 = vld [vmem:[%s1308_s6] sm:$0xff]  ;;  %v245_v33 = vld [vmem:[#allocation2 + $0x30] sm:$0xff]  ;;  %v972_v9 = vmov 1  }
  0x27   :  { %738 = vmatpush3.msra.mxu0 %v90_v10  ;;  %770 = vmatprep.subr.mxu1 %v969_v3  ;;  %v1156_v34 = vld [vmem:[%s1303_s1] sm:$0x3]  ;;  %v341_v35 = vld [vmem:[#allocation5 + $0x78] sm:$0xff]  ;;  %v244_v36 = vld [vmem:[#allocation2 + $0x28] sm:$0xff] }
  0x28   :  { %739 = vmatprep.subr.mxu0 %v969_v3  ;;  %771 = vmatpush3.msra.mxu1 %v75_v11  ;;  %v340_v37 = vld [vmem:[#allocation5 + $0x70] sm:$0xff]  ;;  %v243_v38 = vld [vmem:[#allocation2 + $0x20] sm:$0xff]  ;;  %v339_v39 = vld [vmem:[#allocation5 + $0x68] sm:$0xff] }
  0x29   :  { %740 = vmatpush3.msra.mxu0 %v89_v12  ;;  %775 = vmatprep.subr.mxu1 %v969_v3  ;;  %v242_v40 = vld [vmem:[#allocation2 + $0x18] sm:$0xff]  ;;  %v338_v41 = vld [vmem:[#allocation5 + $0x60] sm:$0xff]  ;;  %v241_v42 = vld [vmem:[#allocation2 + $0x10] sm:$0xff] }
  0x2a   :  { %741 = vmatprep.subr.mxu0 %v969_v3  ;;  %773 = vmatmul.mubr.msk.f32.vlgmr.msra.gmra.mxu1 %vm165_vm2, %v74_v13  ;;  %v337_v43 = vld [vmem:[#allocation5 + $0x58] sm:$0xff]  ;;  %v240_v44 = vld [vmem:[#allocation2 + $0x8] sm:$0xff]  ;;  %v336_v45 = vld [vmem:[#allocation5 + $0x50] sm:$0xff] }
  0x2b   :  { %742 = vmatpush3.msra.mxu0 %v88_v14  ;;  %776 = vmatpush3.msra.mxu1 %v254_v15  ;;  %v239_v46 = vld [vmem:[#allocation2] sm:$0xff]  ;;  %v335_v47 = vld [vmem:[#allocation5 + $0x48] sm:$0xff]  ;;  %v333_v50 = vld [vmem:[#allocation5 + $0x38] sm:$0xff] }
  0x2c   :  { %743 = vmatprep.subr.mxu0 %v969_v3  ;;  %777 = vmatprep.subr.mxu1 %v969_v3  ;;  %v1176_v48 = vld [vmem:[%s1304_s2] sm:$0x3]  ;;  %v332_v51 = vld [vmem:[#allocation5 + $0x30] sm:$0xff]  ;;  %v331_v52 = vld [vmem:[#allocation5 + $0x28] sm:$0xff] }
  0x2d   :  { %744 = vmatpush3.msra.mxu0 %v87_v16  ;;  %778 = vmatpush3.msra.mxu1 %v253_v17  ;;  %v334_v49 = vld [vmem:[#allocation5 + $0x40] sm:$0xff]  ;;  %v329_v54 = vld [vmem:[#allocation5 + $0x18] sm:$0xff]  ;;  %v328_v55 = vld [vmem:[#allocation5 + $0x10] sm:$0xff] }
  0x2e   :  { %745 = vmatprep.subr.mxu0 %v969_v3  ;;  %779 = vmatprep.subr.mxu1 %v969_v3  ;;  %v330_v53 = vld [vmem:[#allocation5 + $0x20] sm:$0xff]  ;;  %v327_v56 = vld [vmem:[#allocation5 + $0x8] sm:$0xff]  ;;  %v436_v10 = vld [vmem:[%s1312_s10 + $0x70] sm:$0xff] }
  0x2f   :  { %746 = vmatpush3.msra.mxu0 %v86_v18  ;;  %780 = vmatpush3.msra.mxu1 %v252_v19  ;;  %v326_v57 = vld [vmem:[#allocation5] sm:$0xff]  ;;  %v435_v11 = vld [vmem:[%s1312_s10 + $0x68] sm:$0xff]  ;;  %v433_v15 = vld [vmem:[%s1312_s10 + $0x58] sm:$0xff] }
  0x30   :  { %747 = vmatprep.subr.mxu0 %v969_v3  ;;  %781 = vmatprep.subr.mxu1 %v969_v3  ;;  %v1198_v58 = vld [vmem:[%s1305_s3] sm:$0x3]  ;;  %v432_v18 = vld [vmem:[%s1312_s10 + $0x50] sm:$0xff] }
  0x31   :  { %748 = vmatpush3.msra.mxu0 %v85_v20  ;;  %782 = vmatpush3.msra.mxu1 %v251_v21  ;;  %v434_v12 = vld [vmem:[%s1312_s10 + $0x60] sm:$0xff]  ;;  %v431_v21 = vld [vmem:[%s1312_s10 + $0x48] sm:$0xff] }
  0x32   :  { %749 = vmatprep.subr.mxu0 %v969_v3  ;;  %783 = vmatprep.subr.mxu1 %v969_v3 }
  0x33   :  { %750 = vmatpush3.msra.mxu0 %v84_v22  ;;  %784 = vmatpush3.msra.mxu1 %v250_v23 }
  0x34   :  { %751 = vmatprep.subr.mxu0 %v969_v3  ;;  %785 = vmatprep.subr.mxu1 %v969_v3 }
  0x35   :  { %752 = vmatpush3.msra.mxu0 %v83_v24  ;;  %786 = vmatpush3.msra.mxu1 %v249_v25  ;;  %v430_v24 = vld [vmem:[%s1312_s10 + $0x40] sm:$0xff] }
  0x36   :  { %753 = vmatprep.subr.mxu0 %v969_v3  ;;  %787 = vmatprep.subr.mxu1 %v969_v3 }
  0x37   :  { %754 = vmatpush3.msra.mxu0 %v82_v26  ;;  %788 = vmatpush3.msra.mxu1 %v248_v27  ;;  %v429_v26 = vld [vmem:[%s1312_s10 + $0x38] sm:$0xff]  ;;  %v428_v27 = vld [vmem:[%s1312_s10 + $0x30] sm:$0xff] }
  0x38   :  { %755 = vmatprep.subr.mxu0 %v969_v3  ;;  %789 = vmatprep.subr.mxu1 %v969_v3 }
  0x39   :  { %756 = vmatpush3.msra.mxu0 %v81_v28  ;;  %790 = vmatpush3.msra.mxu1 %v247_v29  ;;  %v427_v29 = vld [vmem:[%s1312_s10 + $0x28] sm:$0xff] }
  0x3a   :  { %757 = vmatprep.subr.mxu0 %v969_v3  ;;  %791 = vmatprep.subr.mxu1 %v969_v3 }
  0x3b   :  { %758 = vmatpush3.msra.mxu0 %v80_v30  ;;  %792 = vmatpush3.msra.mxu1 %v246_v31  ;;  %v426_v30 = vld [vmem:[%s1312_s10 + $0x20] sm:$0xff] }
  0x3c   :  { %759 = vmatprep.subr.mxu0 %v969_v3  ;;  %793 = vmatprep.subr.mxu1 %v969_v3 }
  0x3d   :  { %760 = vmatpush3.msra.mxu0 %v79_v32  ;;  %794 = vmatpush3.msra.mxu1 %v245_v33  ;;  %v653_v32 = vld [vmem:[%s1311_s9] ss:$0 sm:$0xff]  ;;  %v425_v33 = vld [vmem:[%s1312_s10 + $0x18] sm:$0xff] }
  0x3e   :  { %810 = vmatprep.subr.mxu0 %v969_v3  ;;  %762 = vmatmul.mubr.f32.vlgmr.msra.gmra.mxu0 %v1156_v34 }
  0x3f   :  { %811 = vmatpush3.msra.mxu0 %v341_v35  ;;  %795 = vmatprep.subr.mxu1 %v969_v3 }
  0x40   :  { %812 = vmatprep.subr.mxu0 %v969_v3  ;;  %796 = vmatpush3.msra.mxu1 %v244_v36  ;;  %v424_v36 = vld [vmem:[%s1312_s10 + $0x10] sm:$0xff] }
  0x41   :  { %813 = vmatpush3.msra.mxu0 %v340_v37  ;;  %797 = vmatprep.subr.mxu1 %v969_v3  ;;  %v423_v37 = vld [vmem:[%s1312_s10 + $0x8] sm:$0xff] }
  0x42   :  { %814 = vmatprep.subr.mxu0 %v969_v3  ;;  %798 = vmatpush3.msra.mxu1 %v243_v38 }
  0x43   :  { %815 = vmatpush3.msra.mxu0 %v339_v39  ;;  %799 = vmatprep.subr.mxu1 %v969_v3  ;;  %v422_v39 = vld [vmem:[%s1312_s10] sm:$0xff] }
  0x44   :  { %816 = vmatprep.subr.mxu0 %v969_v3  ;;  %800 = vmatpush3.msra.mxu1 %v242_v40 }
  0x45   :  { %817 = vmatpush3.msra.mxu0 %v338_v41  ;;  %801 = vmatprep.subr.mxu1 %v969_v3 }
  0x46   :  { %818 = vmatprep.subr.mxu0 %v969_v3  ;;  %802 = vmatpush3.msra.mxu1 %v241_v42 }
  0x47   :  { %819 = vmatpush3.msra.mxu0 %v337_v43  ;;  %803 = vmatprep.subr.mxu1 %v969_v3 }
  0x48   :  { %820 = vmatprep.subr.mxu0 %v969_v3  ;;  %804 = vmatpush3.msra.mxu1 %v240_v44 }
  0x49   :  { %821 = vmatpush3.msra.mxu0 %v336_v45  ;;  %805 = vmatprep.subr.mxu1 %v969_v3 }
  0x4a   :  { %822 = vmatprep.subr.mxu0 %v969_v3  ;;  %806 = vmatpush3.msra.mxu1 %v239_v46  ;;  %v973_v46 = vmov 3  }
  0x4b   :  { %823 = vmatpush3.msra.mxu0 %v335_v47  ;;  %807 = vmatprep.mubr.msk.f32.mxu1 %vm970_vm1, %v969_v3  ;;  %v974_v47 = vmov 0  }
  0x4c   :  { %824 = vmatprep.subr.mxu0 %v969_v3  ;;  %808 = vmatmul.mubr.f32.vlgmr.msra.gmra.mxu1 %v1176_v48 }
  0x4d   :  { %825 = vmatpush3.msra.mxu0 %v334_v49  ;;  %842 = vmatprep.mubr.msk.f32.mxu0 %vm970_vm1, %v969_v3 }
  0x4e   :  { %826 = vmatprep.subr.mxu0 %v969_v3  ;;  %845 = vmatprep.subr.mxu1 %v969_v3 }
  0x4f   :  { %827 = vmatpush3.msra.mxu0 %v333_v50  ;;  %877 = vmatprep.mubr.msk.f32.mxu1 %vm970_vm1, %v969_v3 }
  0x50   :  { %828 = vmatprep.subr.mxu0 %v969_v3  ;;  %895 = vset.pattern.permute.xlu0 %v971_v8 }
  0x51   :  { %829 = vmatpush3.msra.mxu0 %v332_v51  ;;  %894 = vset.pattern.permute.xlu1 %v972_v9 }
  0x52   :  { %830 = vmatprep.subr.mxu0 %v969_v3 }
  0x53   :  { %831 = vmatpush3.msra.mxu0 %v331_v52 }
  0x54   :  { %832 = vmatprep.subr.mxu0 %v969_v3 }
  0x55   :  { %833 = vmatpush3.msra.mxu0 %v330_v53 }
  0x56   :  { %834 = vmatprep.subr.mxu0 %v969_v3 }
  0x57   :  { %835 = vmatpush3.msra.mxu0 %v329_v54 }
  0x58   :  { %836 = vmatprep.subr.mxu0 %v969_v3 }
  0x59   :  { %837 = vmatpush3.msra.mxu0 %v328_v55 }
  0x5a   :  { %838 = vmatprep.subr.mxu0 %v969_v3 }
  0x5b   :  { %839 = vmatpush3.msra.mxu0 %v327_v56 }
  0x5c   :  { %840 = vmatprep.subr.mxu0 %v969_v3 }
  0x5d   :  { %841 = vmatpush3.msra.mxu0 %v326_v57 }
  0x5e   :  { %843 = vmatmul.mubr.f32.vlgmr.msra.gmra.mxu0 %v1198_v58 }
  0xa7   :  { %v518_v61 = vpop.xlane.xlu0 %517 }
  0xa8   :  { %vm521_vm3 = vcmp.ge.f32.partialorder %v1053_v0, %v518_v61  ;;  %v437_v0 = vld [vmem:[%s1312_s10 + $0x78] sm:$0xff]  ;;  %s975_s10 = smov 96  }
  0xa9   :  { %v522_v62 = vsel %vm521_vm3, %v1202_v60, 4  ;;  %846 = vmatpush3.msra.mxu1 %v437_v0 }
  0xaa   :  { %v523_v63 = vsel %vm515_vm0, %v522_v62, 2147483647  ;;  %847 = vmatprep.subr.mxu1 %v969_v3 }
  0xab   :  { %v525_v1 = vshra.s32 %v523_v63, 16  ;;  %v524_v4 = vand.u32 65535, %v523_v63  ;;  %848 = vmatpush3.msra.mxu1 %v436_v10 }
  0xac   :  { %849 = vmatprep.subr.mxu1 %v969_v3 }
  0xad   :  { %v527_v2 = vcvt.s32.f32 %v525_v1  ;;  %v526_v6 = vcvt.s32.f32 %v524_v4  ;;  %850 = vmatpush3.msra.mxu1 %v435_v11 }
  0xae   :  { %851 = vmatprep.subr.mxu1 %v969_v3 }
  0xaf   :  { %528 = vmin.xlane.f32.xlu0 %v527_v2  ;;  %852 = vmatpush3.msra.mxu1 %v434_v12  ;;  %v654_v12 = vld [vmem:[%s1313_s11] ss:$0 sm:$0xff]  ;;  %s642_s11 = sshll.u32 %s978_s22, 4  ;;  %s643_s11 = int_to_ptr.vmem [resolvable:$true] %s642_s11 }
  0xb0   :  { %853 = vmatprep.subr.mxu1 %v969_v3  ;;  %s939_s23 = scalar_lea.vmem %s643_s11, 32  ;;  %p944_p11 = scmp.lt.s32.totalorder %s643_s11, %s643_s11 }
  0xb1   :  { %854 = vmatpush3.msra.mxu1 %v433_v15  ;;  %p940_p10 = scmp.ne.s32.totalorder %s643_s11, %s939_s23  ;;  %p945_p12 = scmp.lt.s32.totalorder %s939_s23, %s939_s23 }
  0xb2   :  { %855 = vmatprep.subr.mxu1 %v969_v3 }
  0xb3   :  { %856 = vmatpush3.msra.mxu1 %v432_v18  ;;  %p946_p13 = por %p945_p12, %p944_p11 }
  0xb4   :  { %857 = vmatprep.subr.mxu1 %v969_v3 }
  0xb5   :  { %858 = vmatpush3.msra.mxu1 %v431_v21  ;;  %p947_p0 = pnand %p946_p13, %p940_p10 }
  0xb6   :  { %859 = vmatprep.subr.mxu1 %v969_v3 }
  0xb7   :  { %860 = vmatpush3.msra.mxu1 %v430_v24 }
  0xb8   :  { %861 = vmatprep.subr.mxu1 %v969_v3 }
  0xb9   :  { %862 = vmatpush3.msra.mxu1 %v429_v26 }
  0xba   :  { %863 = vmatprep.subr.mxu1 %v969_v3 }
  0xbb   :  { %864 = vmatpush3.msra.mxu1 %v428_v27 }
  0xbc   :  { %865 = vmatprep.subr.mxu1 %v969_v3 }
  0xbd   :  { %866 = vmatpush3.msra.mxu1 %v427_v29 }
  0xbe   :  { %867 = vmatprep.subr.mxu1 %v969_v3 }
  0xbf   :  { %868 = vmatpush3.msra.mxu1 %v426_v30 }
  0xc0   :  { %869 = vmatprep.subr.mxu1 %v969_v3 }
  0xc1   :  { %870 = vmatpush3.msra.mxu1 %v425_v33 }
  0xc2   :  { %871 = vmatprep.subr.mxu1 %v969_v3 }
  0xc3   :  { %872 = vmatpush3.msra.mxu1 %v424_v36 }
  0xc4   :  { %873 = vmatprep.subr.mxu1 %v969_v3 }
  0xc5   :  { %874 = vmatpush3.msra.mxu1 %v423_v37 }
  0xc6   :  { %875 = vmatprep.subr.mxu1 %v969_v3 }
  0xc7   :  { %876 = vmatpush3.msra.mxu1 %v422_v39 }
  0xea   :  { %v235_v13 = vpop.f32.mrf.mxu1 }
  0xec   :  { %v774_v16 = vpop.f32.mrf.mxu1 }
  0xfe   :  { %v161_v14 = vpop.f32.mrf.mxu0 }
  0xff   :  { %v236_v25 = vadd.f32 %v235_v13, %v161_v14 }
 0x100   :  { %v763_v17 = vpop.f32.mrf.mxu0 }
 0x10c   :  { %v321_v19 = vpop.f32.mrf.mxu1 }
 0x10d   :  { %v325_v28 = vadd.f32 %v321_v19, %v236_v25 }
 0x10e   :  { %v809_v22 = vpop.f32.mrf.mxu1 }
 0x11e   :  { %v408_v20 = vpop.f32.mrf.mxu0 }
 0x11f   :  { %v412_v31 = vadd.f32 %v408_v20, %v325_v28 }
 0x120   :  { %v844_v23 = vpop.f32.mrf.mxu0 }
 0x121   :  { %v420_v35 = vadd.f32 %v653_v32, %v412_v31 }
 0x123   :  { %v421_v38 = vmax.f32 %v420_v35, 0.0 }
 0x125   :  { %878 = vmatmul.mubr.f32.vlgmr.msra.gmra.mxu1 %v421_v38 }
 0x138   :  { %v1207_v5 = vpop.xlane.xlu0 %528 }
 0x139   :  { %vm530_vm4 = vcmp.eq.f32.partialorder %v527_v2, %v1207_v5  ;;  %v535_v40 = vcvt.f32.s32 %v1207_v5 }
 0x13a   :  { %v531_v7 = vsel %vm530_vm4, %v526_v6, inf }
 0x13b   :  { %532 = vmin.xlane.f32.xlu1 %v531_v7  ;;  %v536_v42 = vshll.u32 %v535_v40, 16 }
 0x1c4   :  { %v533_v41 = vpop.xlane.xlu1 %532 }
 0x1c5   :  { %v534_v43 = vcvt.f32.s32 %v533_v41 }
 0x1c7   :  { %v537_v44 = vadd.s32 %v536_v42, %v534_v43 }
 0x1c9   :  { %vm538_vm5 = vcmp.eq.s32.totalorder %v1202_v60, %v537_v44 }
 0x1ca   :  { %v655_v45 = vsel %vm538_vm5, 1.0, %v969_v3 }
 0x1cb   :  { %575 = vperm.xlu0 %895, %v655_v45   ;;  %553 = vperm.xlu1 %894, %v655_v45  }
 0x1cf   :  { %896 = vset.pattern.permute.xlu1 %v973_v46  ;;  %898 = vset.pattern.permute.xlu0 %v973_v46 }
 0x1d0   :  { %597 = vperm.xlu1 %896, %v655_v45  }
 0x1d4   :  { %897 = vset.pattern.permute.xlu1 %v974_v47 }
 0x1d5   :  { %543 = vperm.xlu1 %897, %v655_v45  }
 0x1e5   :  { %v511_v49 = vpop.f32.mrf.mxu1 }
 0x1e6   :  { %v512_v15 = vadd.f32 %v654_v12, %v511_v49 }
 0x1e7   :  { %v879_v50 = vpop.f32.mrf.mxu1 }
 0x246   :  { %v554_v51 = vpop.permute.xlu1 %553  ;;  %v576_v56 = vpop.permute.xlu0 %575 }
 0x247   :  { %v556_v52 = vmul.f32 %v554_v51, %v1156_v34  ;;  %v562_v53 = vmul.f32 %v554_v51, %v1176_v48  ;;  %v568_v54 = vmul.f32 %v554_v51, %v1198_v58  ;;  %v584_v57 = vmul.f32 %v576_v56, %v1176_v48 }
 0x248   :  { %v590_v59 = vmul.f32 %v576_v56, %v1198_v58  ;;  %v578_v62 = vmul.f32 %v576_v56, %v1156_v34 }
 0x249   :  { %558 = vrot.lane.b32.xlu0 %v556_v52, %s975_s10  ;;  %564 = vrot.lane.b32.xlu1 %v562_v53, %s975_s10 }
 0x24b   :  { %v598_v3 = vpop.permute.xlu1 %597 }
 0x24c   :  { %v600_v55 = vmul.f32 %v598_v3, %v1156_v34  ;;  %v606_v60 = vmul.f32 %v598_v3, %v1176_v48  ;;  %v612_v61 = vmul.f32 %v598_v3, %v1198_v58 }
 0x24d   :  { %570 = vrot.lane.b32.xlu1 %v568_v54, %s975_s10 }
 0x24e   :  { %602 = vrot.lane.b32.xlu0 %v600_v55, %s976_s4 }
 0x250   :  { %v544_v63 = vpop.permute.xlu1 %543 }
 0x251   :  { %586 = vrot.lane.b32.xlu1 %v584_v57, %s977_s19  ;;  %v548_v5 = vmul.f32 %v544_v63, %v1176_v48  ;;  %v550_v8 = vmul.f32 %v544_v63, %v1198_v58  ;;  %v546_v17 = vmul.f32 %v544_v63, %v1156_v34 }
 0x255   :  { %592 = vrot.lane.b32.xlu1 %v590_v59, %s977_s19 }
 0x259   :  { %608 = vrot.lane.b32.xlu1 %v606_v60, %s976_s4 }
 0x25d   :  { %614 = vrot.lane.b32.xlu1 %v612_v61, %s976_s4 }
 0x261   :  { %580 = vrot.lane.b32.xlu1 %v578_v62, %s977_s19 }
 0x2bb   :  { %v565_v1 = vpop.permute.xlu1 %564  ;;  %v559_v48 = vpop.permute.xlu0 %558 }
 0x2bc   :  { %v567_v7 = vadd.f32 %v565_v1, %v548_v5  ;;  %v561_v18 = vadd.f32 %v559_v48, %v546_v17 }
 0x2bf   :  { %v571_v2 = vpop.permute.xlu1 %570 }
 0x2c0   :  { %v573_v10 = vadd.f32 %v571_v2, %v550_v8  ;;  %v603_v20 = vpop.permute.xlu0 %602 }
 0x2c3   :  { %v587_v4 = vpop.permute.xlu1 %586 }
 0x2c4   :  { %v589_v9 = vadd.f32 %v587_v4, %v567_v7 }
 0x2c7   :  { %v593_v6 = vpop.permute.xlu1 %592 }
 0x2c8   :  { %v595_v13 = vadd.f32 %v593_v6, %v573_v10 }
 0x2cb   :  { %v609_v0 = vpop.permute.xlu1 %608 }
 0x2cc   :  { %v611_v11 = vadd.f32 %v609_v0, %v589_v9 }
 0x2ce   :  { %619 = vrot.lane.b32.xlu1 %v611_v11, %s976_s4 }
 0x2cf   :  { %v615_v14 = vpop.permute.xlu1 %614 }
 0x2d0   :  { %v617_v16 = vadd.f32 %v615_v14, %v595_v13 }
 0x2d2   :  { %627 = vrot.lane.b32.xlu1 %v512_v15, %s975_s10  ;;  %623 = vrot.lane.b32.xlu0 %v617_v16, %s977_s19 }
 0x2d3   :  { %v581_v58 = vpop.permute.xlu1 %580 }
 0x2d4   :  { %v583_v19 = vadd.f32 %v581_v58, %v561_v18 }
 0x2d6   :  { %v605_v22 = vadd.f32 %v603_v20, %v583_v19 }
 0x340   :  { %v620_v21 = vpop.permute.xlu1 %619 }
 0x341   :  { %v630_v23 = vsel %vm165_vm2, %v605_v22, %v620_v21 }
 0x344   :  { %v624_v24 = vpop.permute.xlu0 %623  ;;  %v628_v25 = vpop.permute.xlu1 %627 }
 0x345   :  { %v632_v26 = vsel %vm631_vm6, %v630_v23, %v624_v24 }
 0x346   :  { %v634_v27 = vsel %vm633_vm7, %v632_v26, %v628_v25 }
 0x347   :  { %635 = vst [vmem:[#allocation7] sm:$0x3] %v634_v27 }
 0x348   :  { %950 = shalt.err (!%p947_p0)
}
 0x349   :  { %645 = dma.vmem_to_hbm [thread:$0]  %s643_s11, 32, %s1314_s12, [#allocation4]  }
 0x34a   :  { %963 = dma.done.wait [#allocation4], 32  }
 0x34b   :  { %964 = vsyncadd [#allocation4], 4294967264 }
 0x34c   :  { %649 = vsyncpa [#allocation3], 1 }
 0x34d   :  { %650 = vsyncpa [#allocation6], 1 }
 0x34e   :  { %651 = vsyncpa [#allocation4], 1 }

</bundles_post_ra>
